<compile_context>
chip_gen: v7x
topology: tpu7x:2x2x1
jax: 0.10.0
libtpu: 0.0.40
codegen_flags: <defaults>
</compile_context>

<pallas_src>
import math

import jax
import jax.numpy as jnp
from jax.experimental import pallas as pl
from jax.experimental.pallas import tpu as pltpu


# ---------------------------------------------------------------------------
# Kernels
# ---------------------------------------------------------------------------

def _head_attention_kernel(q_ref, k_ref, v_ref,
                           wq_ref, wk_ref, wv_ref,
                           bq_ref, bk_ref, bv_ref,
                           o_ref):
    """Single-pass path: full (Lq, Lk) scores for one batch tile."""
    TB, Lq, Din = q_ref.shape
    _, Lk, _ = k_ref.shape
    Dk = wq_ref.shape[1]
    Dv = wv_ref.shape[1]

    # Linear projections: one (TB*L, Din) @ (Din, Dout) bf16 MXU matmul each,
    # f32 accumulation, f32 bias add (inputs/weights pre-cast to bf16 by the
    # wrapper, so no per-step casts here).
    q = jnp.dot(q_ref[...].reshape(TB * Lq, Din), wq_ref[...],
                preferred_element_type=jnp.float32) + bq_ref[...]
    k = jnp.dot(k_ref[...].reshape(TB * Lk, Din), wk_ref[...],
                preferred_element_type=jnp.float32) + bk_ref[...]
    v = jnp.dot(v_ref[...].reshape(TB * Lk, Din), wv_ref[...],
                preferred_element_type=jnp.float32) + bv_ref[...]

    # Fold 1/sqrt(Dk) into Q (Lq*Dk elems; cheaper than scaling (Lq, Lk)).
    q = q * (1.0 / math.sqrt(Dk))

    q3 = q.reshape(TB, Lq, Dk).astype(jnp.bfloat16)
    k3 = k.reshape(TB, Lk, Dk).astype(jnp.bfloat16)
    v3 = v.reshape(TB, Lk, Dv).astype(jnp.bfloat16)

    # Scores: contraction over the last axis of both operands (no transpose).
    s = jnp.einsum("bqd,bkd->bqk", q3, k3,
                   preferred_element_type=jnp.float32)        # (TB, Lq, Lk) f32

    # Max-stabilized softmax in f32.  Normalization is applied AFTER the PV
    # matmul: the VPU multiply is over (Lq, Dv) instead of (Lq, Lk).
    m = jnp.max(s, axis=-1, keepdims=True)
    p = jnp.exp(s - m)
    denom = jnp.sum(p, axis=-1, keepdims=True)

    out = jnp.einsum("bqk,bkd->bqd", p.astype(jnp.bfloat16), v3,
                     preferred_element_type=jnp.float32)       # (TB, Lq, Dv)
    out = out * pl.reciprocal(denom, approx=True)              # EUP slot
    o_ref[...] = out.reshape(o_ref.shape).astype(o_ref.dtype)


def _flash_head_attention_kernel(q_ref, k_ref, v_ref,
                                 wq_ref, wk_ref, wv_ref,
                                 bq_ref, bk_ref, bv_ref,
                                 o_ref,
                                 m_sc, l_sc, acc_sc):
    """Flash-style path: online softmax over Lk tiles (second grid axis)."""
    kv = pl.program_id(1)
    TB, Lq, Din = q_ref.shape
    _, TLk, _ = k_ref.shape
    Dk = wq_ref.shape[1]
    Dv = wv_ref.shape[1]

    @pl.when(kv == 0)
    def _():
        m_sc[...] = jnp.full_like(m_sc, -jnp.inf)
        l_sc[...] = jnp.zeros_like(l_sc)
        acc_sc[...] = jnp.zeros_like(acc_sc)

    # Q projection (redone per kv step; ~Lq/TLk of the per-step MXU work, and
    # the q block itself is grid-invariant along kv so it is not re-DMA'd).
    q = jnp.dot(q_ref[...].reshape(TB * Lq, Din), wq_ref[...],
                preferred_element_type=jnp.float32) + bq_ref[...]
    q = q * (1.0 / math.sqrt(Dk))
    q3 = q.reshape(TB, Lq, Dk).astype(jnp.bfloat16)

    # K/V projections for this Lk tile.
    k = jnp.dot(k_ref[...].reshape(TB * TLk, Din), wk_ref[...],
                preferred_element_type=jnp.float32) + bk_ref[...]
    v = jnp.dot(v_ref[...].reshape(TB * TLk, Din), wv_ref[...],
                preferred_element_type=jnp.float32) + bv_ref[...]
    k3 = k.reshape(TB, TLk, Dk).astype(jnp.bfloat16)
    v3 = v.reshape(TB, TLk, Dv).astype(jnp.bfloat16)

    s = jnp.einsum("bqd,bkd->bqk", q3, k3,
                   preferred_element_type=jnp.float32)         # (TB, Lq, TLk)
    m_new = jnp.maximum(m_sc[...], jnp.max(s, axis=-1, keepdims=True))
    alpha = jnp.exp(m_sc[...] - m_new)
    p = jnp.exp(s - m_new)
    l_sc[...] = alpha * l_sc[...] + jnp.sum(p, axis=-1, keepdims=True)
    acc_sc[...] = alpha * acc_sc[...] + jnp.einsum(
        "bqk,bkd->bqd", p.astype(jnp.bfloat16), v3,
        preferred_element_type=jnp.float32)
    m_sc[...] = m_new

    @pl.when(kv == pl.num_programs(1) - 1)
    def _():
        out = acc_sc[...] * pl.reciprocal(l_sc[...], approx=True)
        o_ref[...] = out.reshape(o_ref.shape).astype(o_ref.dtype)


# ---------------------------------------------------------------------------
# Generation-aware sizing helpers
# ---------------------------------------------------------------------------

_TARGET_ROWS = 512          # fills the 256-wide MXU on v6e/v7x, amortizes step overhead
_FLASH_LK_THRESHOLD = 1024  # switch to the online-softmax path above this Lk


def _vmem_limit_bytes():
    """Scoped-VMEM limit: ~75% of physical, capped at 100 MiB."""
    cap = None
    try:
        cap = int(pltpu.get_tpu_info().vmem_capacity_bytes)
    except Exception:
        cap = None
    if not cap or cap <= 0:
        cap = 64 * 1024 * 1024        # conservative (v7x physical VMEM)
    return int(min(cap * 3 // 4, 100 * 1024 * 1024))


def _tensorcores_per_chip():
    """Only chips with >1 TensorCore benefit from splitting the batch grid."""
    try:
        kind = jax.devices()[0].device_kind.lower()
    except Exception:
        return 1
    return 2 if ("v7" in kind or "v4" in kind) else 1


def _simple_vmem_bytes(tb, Lq, Lk, Din, Dk, Dv):
    """Conservative per-step VMEM estimate for the single-pass path."""
    bf16, f32 = 2, 4
    inputs = 2 * (tb * Lq * Din + 2 * tb * Lk * Din) * bf16        # double-buffered q,k,v
    weights = 2 * Din * (2 * Dk + Dv) * bf16 + 2 * (2 * Dk + Dv) * f32
    outputs = 2 * tb * Lq * Dv * f32
    proj = (tb * Lq * Dk + tb * Lk * (Dk + Dv)) * (f32 + bf16)
    scores = 2 * tb * Lq * Lk * f32                                # s and exp(s-m)
    return inputs + weights + outputs + proj + scores


def _flash_vmem_bytes(tb, Lq, tlk, Din, Dk, Dv):
    """Conservative per-step VMEM estimate for the flash path."""
    bf16, f32 = 2, 4
    inputs = 2 * tb * Lq * Din * bf16 + 2 * 2 * tb * tlk * Din * bf16
    weights = 2 * Din * (2 * Dk + Dv) * bf16 + 2 * (2 * Dk + Dv) * f32
    outputs = 2 * tb * Lq * Dv * f32
    scratch = 2 * tb * Lq * f32 + tb * Lq * Dv * f32
    proj = (tb * Lq * Dk + tb * tlk * (Dk + Dv)) * (f32 + bf16)
    scores = 2 * tb * Lq * tlk * f32
    return inputs + weights + outputs + scratch + proj + scores


def _pick_batch_tile(B, Lq, bytes_fn, budget, two_cores):
    """Largest batch tile dividing B that hits ~_TARGET_ROWS rows and fits VMEM."""
    tb = max(1, min(B, _TARGET_ROWS // max(Lq, 1)))
    if two_cores and B >= 2:
        tb = min(tb, max(1, B // 2))      # keep >=2 parallel steps only when it buys a 2nd TC
    while tb > 1 and (B % tb != 0 or bytes_fn(tb) > budget):
        tb -= 1
    return max(1, tb)


def _pick_lk_tile(Lk, max_tile=1024):
    """Largest divisor of Lk that is a multiple of 8 and <= max_tile (None if none)."""
    for d in range(min(Lk, max_tile), 7, -1):
        if Lk % d == 0 and d % 8 == 0:
            return d
    return None


# ---------------------------------------------------------------------------
# Wrapper
# ---------------------------------------------------------------------------

def head_attention(query, key, value, wq, wk, wv, bq, bk, bv):
    """query: (B, Lq, Din); key/value: (B, Lk, Din).
    wq/wk: (Din, Dk), wv: (Din, Dv); bq/bk: (1, Dk), bv: (1, Dv).
    Returns softmax((xWq+bq)(xWk+bk)^T / sqrt(Dk)) (xWv+bv), shape (B, Lq, Dv)."""
    B, Lq, Din = query.shape
    _, Lk, _ = key.shape
    Dk = wq.shape[1]
    Dv = wv.shape[1]
    out_dtype = query.dtype

    # Pre-cast all MXU operands to bf16 ONCE (halves HBM->VMEM DMA bytes and
    # removes per-grid-step VPU casts).  Biases stay f32.
    q_bf = query.astype(jnp.bfloat16)
    k_bf = key.astype(jnp.bfloat16)
    v_bf = value.astype(jnp.bfloat16)
    wq_bf = wq.astype(jnp.bfloat16)
    wk_bf = wk.astype(jnp.bfloat16)
    wv_bf = wv.astype(jnp.bfloat16)
    bq2 = bq.reshape(1, Dk).astype(jnp.float32)
    bk2 = bk.reshape(1, Dk).astype(jnp.float32)
    bv2 = bv.reshape(1, Dv).astype(jnp.float32)
    # TODO(synk): when key is value (common self/cross-attention), fuse the K
    # and V projections into one (Din, Dk+Dv) matmul and drop the third input
    # stream; likewise fuse all heads of a multi-head layer for MXU fill.

    vmem_limit = _vmem_limit_bytes()
    budget = int(vmem_limit * 0.8)            # headroom for compiler scratch
    two_cores = _tensorcores_per_chip() >= 2

    # Choose between single-pass and flash (online-softmax over Lk tiles).
    tlk = _pick_lk_tile(Lk)
    use_flash = (
        tlk is not None and tlk < Lk and
        (Lk > _FLASH_LK_THRESHOLD or
         _simple_vmem_bytes(1, Lq, Lk, Din, Dk, Dv) > budget))
    # TODO(synk): unaligned Lq/Lk (not multiples of 8) or Lk with no usable
    # divisor would need padding + score masking to use the flash path.

    if use_flash:
        bytes_fn = lambda tb: _flash_vmem_bytes(tb, Lq, tlk, Din, Dk, Dv)
    else:
        bytes_fn = lambda tb: _simple_vmem_bytes(tb, Lq, Lk, Din, Dk, Dv)
    TB = _pick_batch_tile(B, Lq, bytes_fn, budget, two_cores)

    # Lane-dense output: Dv < 128 lowers to masked vst.msk partial stores; if
    # Lq*Dv is a multiple of 128 (and the batch tile keeps the block legal),
    # write a flattened (B, Lq*Dv) slab instead and reshape back here.
    lane_dense = ((Dv % 128 != 0) and ((Lq * Dv) % 128 == 0)
                  and (TB == B or TB % 8 == 0))

    if use_flash:
        grid = (B // TB, Lk // tlk)
        in_specs = [
            pl.BlockSpec((TB, Lq, Din), lambda b, kv: (b, 0, 0)),   # query
            pl.BlockSpec((TB, tlk, Din), lambda b, kv: (b, kv, 0)),  # key tile
            pl.BlockSpec((TB, tlk, Din), lambda b, kv: (b, kv, 0)),  # value tile
            pl.BlockSpec((Din, Dk), lambda b, kv: (0, 0)),           # wq
            pl.BlockSpec((Din, Dk), lambda b, kv: (0, 0)),           # wk
            pl.BlockSpec((Din, Dv), lambda b, kv: (0, 0)),           # wv
            pl.BlockSpec((1, Dk), lambda b, kv: (0, 0)),             # bq
            pl.BlockSpec((1, Dk), lambda b, kv: (0, 0)),             # bk
            pl.BlockSpec((1, Dv), lambda b, kv: (0, 0)),             # bv
        ]
        if lane_dense:
            out_shape = jax.ShapeDtypeStruct((B, Lq * Dv), out_dtype)
            out_specs = pl.BlockSpec((TB, Lq * Dv), lambda b, kv: (b, 0))
        else:
            out_shape = jax.ShapeDtypeStruct((B, Lq, Dv), out_dtype)
            out_specs = pl.BlockSpec((TB, Lq, Dv), lambda b, kv: (b, 0, 0))
        scratch_shapes = [
            pltpu.VMEM((TB, Lq, 1), jnp.float32),   # running max
            pltpu.VMEM((TB, Lq, 1), jnp.float32),   # running denominator
            pltpu.VMEM((TB, Lq, Dv), jnp.float32),  # output accumulator
        ]
        kernel = _flash_head_attention_kernel
        dims = ("parallel", "arbitrary")
    else:
        grid = (B // TB,)
        in_specs = [
            pl.BlockSpec((TB, Lq, Din), lambda b: (b, 0, 0)),  # query
            pl.BlockSpec((TB, Lk, Din), lambda b: (b, 0, 0)),  # key
            pl.BlockSpec((TB, Lk, Din), lambda b: (b, 0, 0)),  # value
            pl.BlockSpec((Din, Dk), lambda b: (0, 0)),         # wq (grid-invariant)
            pl.BlockSpec((Din, Dk), lambda b: (0, 0)),         # wk
            pl.BlockSpec((Din, Dv), lambda b: (0, 0)),         # wv
            pl.BlockSpec((1, Dk), lambda b: (0, 0)),           # bq
            pl.BlockSpec((1, Dk), lambda b: (0, 0)),           # bk
            pl.BlockSpec((1, Dv), lambda b: (0, 0)),           # bv
        ]
        if lane_dense:
            out_shape = jax.ShapeDtypeStruct((B, Lq * Dv), out_dtype)
            out_specs = pl.BlockSpec((TB, Lq * Dv), lambda b: (b, 0))
        else:
            out_shape = jax.ShapeDtypeStruct((B, Lq, Dv), out_dtype)
            out_specs = pl.BlockSpec((TB, Lq, Dv), lambda b: (b, 0, 0))
        scratch_shapes = []
        kernel = _head_attention_kernel
        dims = ("parallel",)

    out = pl.pallas_call(
        kernel,
        out_shape=out_shape,
        grid_spec=pltpu.PrefetchScalarGridSpec(
            num_scalar_prefetch=0,
            grid=grid,
            in_specs=in_specs,
            out_specs=out_specs,
            scratch_shapes=scratch_shapes,
        ),
        compiler_params=pltpu.CompilerParams(
            dimension_semantics=dims,
            vmem_limit_bytes=vmem_limit,
        ),
    )(q_bf, k_bf, v_bf, wq_bf, wk_bf, wv_bf, bq2, bk2, bv2)

    if lane_dense:
        out = out.reshape(B, Lq, Dv)
    return out


def head_attention_ref(query, key, value, wq, wk, wv, bq, bk, bv):
    """Plain-JAX f32 reference mirroring the PyTorch module."""
    q = query @ wq + bq
    k = key @ wk + bk
    v = value @ wv + bv
    s = jnp.einsum("bqd,bkd->bqk", q, k) / math.sqrt(q.shape[-1])
    p = jax.nn.softmax(s, axis=-1)
    return jnp.einsum("bqk,bkd->bqd", p, v)


# ---------------------------------------------------------------------------
# Test
# ---------------------------------------------------------------------------

if __name__ == "__main__":
    def make_inputs(rng_key, B, Lq, Lk, Din, Dk, Dv):
        ks = jax.random.split(rng_key, 9)
        bound = 1.0 / math.sqrt(Din)   # nn.Linear-style init, weights stored (Din, Dout)
        query = jax.random.normal(ks[0], (B, Lq, Din), jnp.float32)
        keyt = jax.random.normal(ks[1], (B, Lk, Din), jnp.float32)
        value = jax.random.normal(ks[2], (B, Lk, Din), jnp.float32)
        wq = jax.random.uniform(ks[3], (Din, Dk), jnp.float32, -bound, bound)
        wk = jax.random.uniform(ks[4], (Din, Dk), jnp.float32, -bound, bound)
        wv = jax.random.uniform(ks[5], (Din, Dv), jnp.float32, -bound, bound)
        bq = jax.random.uniform(ks[6], (1, Dk), jnp.float32, -bound, bound)
        bk = jax.random.uniform(ks[7], (1, Dk), jnp.float32, -bound, bound)
        bv = jax.random.uniform(ks[8], (1, Dv), jnp.float32, -bound, bound)
        return query, keyt, value, wq, wk, wv, bq, bk, bv

    # Small shapes consistent with the module (single-pass path, lane-dense store).
    args = make_inputs(jax.random.PRNGKey(0), B=2, Lq=8, Lk=8, Din=32, Dk=16, Dv=16)
    out = jax.block_until_ready(head_attention(*args))
    ref = head_attention_ref(*args)
    assert out.shape == (2, 8, 16)
    # Tolerance relaxed for bf16 MXU inputs + EUP approx reciprocal.
    assert jnp.allclose(out, ref, atol=5e-2, rtol=5e-2), "simple-path mismatch vs reference"

    # Longer Lk to exercise the flash-style online-softmax path.
    args2 = make_inputs(jax.random.PRNGKey(1), B=2, Lq=128, Lk=2048, Din=128, Dk=64, Dv=128)
    out2 = jax.block_until_ready(head_attention(*args2))
    ref2 = head_attention_ref(*args2)
    assert out2.shape == (2, 128, 128)
    assert jnp.allclose(out2, ref2, atol=5e-2, rtol=5e-2), "flash-path mismatch vs reference"

    print("KERNEL_OK")
</pallas_src>

<mosaic_0001>
module attributes {stable_mosaic.version = 11 : i64} {
  func.func @_head_attention_kernel(%arg0: i32, %arg1: memref<2x8x32xbf16, #tpu.memory_space<vmem>>, %arg2: memref<2x8x32xbf16, #tpu.memory_space<vmem>>, %arg3: memref<2x8x32xbf16, #tpu.memory_space<vmem>>, %arg4: memref<32x16xbf16, #tpu.memory_space<vmem>>, %arg5: memref<32x16xbf16, #tpu.memory_space<vmem>>, %arg6: memref<32x16xbf16, #tpu.memory_space<vmem>>, %arg7: memref<1x16xf32, #tpu.memory_space<vmem>>, %arg8: memref<1x16xf32, #tpu.memory_space<vmem>>, %arg9: memref<1x16xf32, #tpu.memory_space<vmem>>, %arg10: memref<2x128xf32, #tpu.memory_space<vmem>>) attributes {dimension_semantics = [#tpu.dimension_semantics<parallel>], iteration_bounds = array<i64: 1>, scalar_prefetch = 0 : i64, scratch_operands = 0 : i64, tpu.core_type = #tpu.core_type<tc>, window_params = [{transform_indices = @transform_0, window_bounds = array<i64: 2, 8, 32>}, {transform_indices = @transform_1, window_bounds = array<i64: 2, 8, 32>}, {transform_indices = @transform_2, window_bounds = array<i64: 2, 8, 32>}, {pipeline_mode = #tpu.pipeline_mode<synchronous>, transform_indices = @transform_3, window_bounds = array<i64: 32, 16>}, {pipeline_mode = #tpu.pipeline_mode<synchronous>, transform_indices = @transform_4, window_bounds = array<i64: 32, 16>}, {pipeline_mode = #tpu.pipeline_mode<synchronous>, transform_indices = @transform_5, window_bounds = array<i64: 32, 16>}, {pipeline_mode = #tpu.pipeline_mode<synchronous>, transform_indices = @transform_6, window_bounds = array<i64: 1, 16>}, {pipeline_mode = #tpu.pipeline_mode<synchronous>, transform_indices = @transform_7, window_bounds = array<i64: 1, 16>}, {pipeline_mode = #tpu.pipeline_mode<synchronous>, transform_indices = @transform_8, window_bounds = array<i64: 1, 16>}, {transform_indices = @transform_9, window_bounds = array<i64: 2, 128>}]} {
    %c0 = arith.constant 0 : index
    %c0_0 = arith.constant 0 : index
    %c0_1 = arith.constant 0 : index
    %0 = vector.load %arg1[%c0, %c0_0, %c0_1] : memref<2x8x32xbf16, #tpu.memory_space<vmem>>, vector<2x8x32xbf16>
    %1 = vector.shape_cast %0 : vector<2x8x32xbf16> to vector<16x32xbf16>
    %c0_2 = arith.constant 0 : index
    %c0_3 = arith.constant 0 : index
    %2 = vector.load %arg4[%c0_2, %c0_3] : memref<32x16xbf16, #tpu.memory_space<vmem>>, vector<32x16xbf16>
    %cst = arith.constant dense<0.000000e+00> : vector<16x16xf32>
    %3 = tpu.matmul %1, %2, %cst {dimension_numbers = #tpu.dot_dimension_numbers<[1], [0], [0], [1], [0, 0, 1, 1], [], []>} : vector<16x32xbf16>, vector<32x16xbf16>, vector<16x16xf32> -> vector<16x16xf32>
    %c0_4 = arith.constant 0 : index
    %c0_5 = arith.constant 0 : index
    %4 = vector.load %arg7[%c0_4, %c0_5] : memref<1x16xf32, #tpu.memory_space<vmem>>, vector<1x16xf32>
    %5 = vector.broadcast %4 : vector<1x16xf32> to vector<16x16xf32>
    %6 = arith.addf %3, %5 : vector<16x16xf32>
    %c0_6 = arith.constant 0 : index
    %c0_7 = arith.constant 0 : index
    %c0_8 = arith.constant 0 : index
    %7 = vector.load %arg2[%c0_6, %c0_7, %c0_8] : memref<2x8x32xbf16, #tpu.memory_space<vmem>>, vector<2x8x32xbf16>
    %8 = vector.shape_cast %7 : vector<2x8x32xbf16> to vector<16x32xbf16>
    %c0_9 = arith.constant 0 : index
    %c0_10 = arith.constant 0 : index
    %9 = vector.load %arg5[%c0_9, %c0_10] : memref<32x16xbf16, #tpu.memory_space<vmem>>, vector<32x16xbf16>
    %cst_11 = arith.constant dense<0.000000e+00> : vector<16x16xf32>
    %10 = tpu.matmul %8, %9, %cst_11 {dimension_numbers = #tpu.dot_dimension_numbers<[1], [0], [0], [1], [0, 0, 1, 1], [], []>} : vector<16x32xbf16>, vector<32x16xbf16>, vector<16x16xf32> -> vector<16x16xf32>
    %c0_12 = arith.constant 0 : index
    %c0_13 = arith.constant 0 : index
    %11 = vector.load %arg8[%c0_12, %c0_13] : memref<1x16xf32, #tpu.memory_space<vmem>>, vector<1x16xf32>
    %12 = vector.broadcast %11 : vector<1x16xf32> to vector<16x16xf32>
    %13 = arith.addf %10, %12 : vector<16x16xf32>
    %c0_14 = arith.constant 0 : index
    %c0_15 = arith.constant 0 : index
    %c0_16 = arith.constant 0 : index
    %14 = vector.load %arg3[%c0_14, %c0_15, %c0_16] : memref<2x8x32xbf16, #tpu.memory_space<vmem>>, vector<2x8x32xbf16>
    %15 = vector.shape_cast %14 : vector<2x8x32xbf16> to vector<16x32xbf16>
    %c0_17 = arith.constant 0 : index
    %c0_18 = arith.constant 0 : index
    %16 = vector.load %arg6[%c0_17, %c0_18] : memref<32x16xbf16, #tpu.memory_space<vmem>>, vector<32x16xbf16>
    %cst_19 = arith.constant dense<0.000000e+00> : vector<16x16xf32>
    %17 = tpu.matmul %15, %16, %cst_19 {dimension_numbers = #tpu.dot_dimension_numbers<[1], [0], [0], [1], [0, 0, 1, 1], [], []>} : vector<16x32xbf16>, vector<32x16xbf16>, vector<16x16xf32> -> vector<16x16xf32>
    %c0_20 = arith.constant 0 : index
    %c0_21 = arith.constant 0 : index
    %18 = vector.load %arg9[%c0_20, %c0_21] : memref<1x16xf32, #tpu.memory_space<vmem>>, vector<1x16xf32>
    %19 = vector.broadcast %18 : vector<1x16xf32> to vector<16x16xf32>
    %20 = arith.addf %17, %19 : vector<16x16xf32>
    %cst_22 = arith.constant 2.500000e-01 : f32
    %21 = vector.broadcast %cst_22 : f32 to vector<16x16xf32>
    %22 = arith.mulf %6, %21 : vector<16x16xf32>
    %23 = vector.shape_cast %22 : vector<16x16xf32> to vector<2x8x16xf32>
    %24 = arith.truncf %23 : vector<2x8x16xf32> to vector<2x8x16xbf16>
    %25 = vector.shape_cast %13 : vector<16x16xf32> to vector<2x8x16xf32>
    %26 = arith.truncf %25 : vector<2x8x16xf32> to vector<2x8x16xbf16>
    %27 = vector.shape_cast %20 : vector<16x16xf32> to vector<2x8x16xf32>
    %28 = arith.truncf %27 : vector<2x8x16xf32> to vector<2x8x16xbf16>
    "tpu.trace_start"() <{level = 10 : i32, message = "bqd,bkd->bqk"}> : () -> ()
    %cst_23 = arith.constant dense<0.000000e+00> : vector<2x8x8xf32>
    %29 = tpu.matmul %24, %26, %cst_23 {dimension_numbers = #tpu.dot_dimension_numbers<[2], [2], [1], [1], [0, 0, 0, 1, 1, 1], [0], [0]>} : vector<2x8x16xbf16>, vector<2x8x16xbf16>, vector<2x8x8xf32> -> vector<2x8x8xf32>
    "tpu.trace_stop"() : () -> ()
    %cst_24 = arith.constant dense<0xFF800000> : vector<2x8xf32>
    %30 = vector.multi_reduction <maximumf>, %29, %cst_24 [2] : vector<2x8x8xf32> to vector<2x8xf32>
    %31 = vector.shape_cast %30 : vector<2x8xf32> to vector<2x8x1xf32>
    %32 = vector.broadcast %31 : vector<2x8x1xf32> to vector<2x8x8xf32>
    %33 = arith.subf %29, %32 : vector<2x8x8xf32>
    %34 = math.exp %33 : vector<2x8x8xf32>
    %cst_25 = arith.constant dense<0.000000e+00> : vector<2x8xf32>
    %35 = vector.multi_reduction <add>, %34, %cst_25 [2] : vector<2x8x8xf32> to vector<2x8xf32>
    %36 = vector.shape_cast %35 : vector<2x8xf32> to vector<2x8x1xf32>
    %37 = arith.truncf %34 : vector<2x8x8xf32> to vector<2x8x8xbf16>
    "tpu.trace_start"() <{level = 10 : i32, message = "bqk,bkd->bqd"}> : () -> ()
    %cst_26 = arith.constant dense<0.000000e+00> : vector<2x8x16xf32>
    %38 = tpu.matmul %37, %28, %cst_26 {dimension_numbers = #tpu.dot_dimension_numbers<[2], [1], [1], [2], [0, 0, 0, 1, 1, 2], [0], [0]>} : vector<2x8x8xbf16>, vector<2x8x16xbf16>, vector<2x8x16xf32> -> vector<2x8x16xf32>
    "tpu.trace_stop"() : () -> ()
    %39 = tpu.reciprocal %36 {approx = true} : vector<2x8x1xf32> -> vector<2x8x1xf32>
    %40 = vector.broadcast %39 : vector<2x8x1xf32> to vector<2x8x16xf32>
    %41 = arith.mulf %38, %40 : vector<2x8x16xf32>
    %42 = vector.shape_cast %41 : vector<2x8x16xf32> to vector<2x128xf32>
    %c0_27 = arith.constant 0 : index
    %c0_28 = arith.constant 0 : index
    %43 = vector.load %arg10[%c0_27, %c0_28] : memref<2x128xf32, #tpu.memory_space<vmem>>, vector<2x128xf32>
    tpu.vector_store %arg10[%c0_27, %c0_28], %42 {strides = array<i32>} : memref<2x128xf32, #tpu.memory_space<vmem>>, vector<2x128xf32>,
    return
  }
  func.func @transform_0(%arg0: i32) -> (i32, i32, i32) {
    %c0_i32 = arith.constant 0 : i32
    %c0_i32_0 = arith.constant 0 : i32
    %c0_i32_1 = arith.constant 0 : i32
    return %arg0, %c0_i32, %c0_i32_0 : i32, i32, i32
  }
  func.func @transform_1(%arg0: i32) -> (i32, i32, i32) {
    %c0_i32 = arith.constant 0 : i32
    %c0_i32_0 = arith.constant 0 : i32
    %c0_i32_1 = arith.constant 0 : i32
    return %arg0, %c0_i32, %c0_i32_0 : i32, i32, i32
  }
  func.func @transform_2(%arg0: i32) -> (i32, i32, i32) {
    %c0_i32 = arith.constant 0 : i32
    %c0_i32_0 = arith.constant 0 : i32
    %c0_i32_1 = arith.constant 0 : i32
    return %arg0, %c0_i32, %c0_i32_0 : i32, i32, i32
  }
  func.func @transform_3(%arg0: i32) -> (i32, i32) {
    %c0_i32 = arith.constant 0 : i32
    %c0_i32_0 = arith.constant 0 : i32
    %c0_i32_1 = arith.constant 0 : i32
    return %c0_i32, %c0_i32_0 : i32, i32
  }
  func.func @transform_4(%arg0: i32) -> (i32, i32) {
    %c0_i32 = arith.constant 0 : i32
    %c0_i32_0 = arith.constant 0 : i32
    %c0_i32_1 = arith.constant 0 : i32
    return %c0_i32, %c0_i32_0 : i32, i32
  }
  func.func @transform_5(%arg0: i32) -> (i32, i32) {
    %c0_i32 = arith.constant 0 : i32
    %c0_i32_0 = arith.constant 0 : i32
    %c0_i32_1 = arith.constant 0 : i32
    return %c0_i32, %c0_i32_0 : i32, i32
  }
  func.func @transform_6(%arg0: i32) -> (i32, i32) {
    %c0_i32 = arith.constant 0 : i32
    %c0_i32_0 = arith.constant 0 : i32
    %c0_i32_1 = arith.constant 0 : i32
    return %c0_i32, %c0_i32_0 : i32, i32
  }
  func.func @transform_7(%arg0: i32) -> (i32, i32) {
    %c0_i32 = arith.constant 0 : i32
    %c0_i32_0 = arith.constant 0 : i32
    %c0_i32_1 = arith.constant 0 : i32
    return %c0_i32, %c0_i32_0 : i32, i32
  }
  func.func @transform_8(%arg0: i32) -> (i32, i32) {
    %c0_i32 = arith.constant 0 : i32
    %c0_i32_0 = arith.constant 0 : i32
    %c0_i32_1 = arith.constant 0 : i32
    return %c0_i32, %c0_i32_0 : i32, i32
  }
  func.func @transform_9(%arg0: i32) -> (i32, i32) {
    %c0_i32 = arith.constant 0 : i32
    %c0_i32_0 = arith.constant 0 : i32
    return %arg0, %c0_i32 : i32, i32
  }
}

</mosaic_0001>

<bundles_post_ra>
// kernel: tpu_custom_call.1
= control target key start
LH: loop header
LB: loop body
LE: loop exit
PB: predicated region body
PF: predicated region fallthrough
CT: control target
= control target key end

     0   :  { %v734_v1 = vmov 0.0   ;;  %vm735_vm0 = vmmov 0   ;;  %vm64_vm1 = vcmask 261120   ;;  %s889_s0 = inlined_call_operand.vmem [shape: bf16[2,8,32], index: 0, kind: input, shape index: {}]   ;;  %s890_s1 = inlined_call_operand.vmem [shape: bf16[2,8,32], index: 1, kind: input, shape index: {}]   ;;  %s891_s2 = inlined_call_operand.vmem [shape: bf16[2,8,32], index: 2, kind: input, shape index: {}]   ;;  %s892_s3 = inlined_call_operand.vmem [shape: bf16[32,16], index: 3, kind: input, shape index: {}]   ;;  %s893_s4 = inlined_call_operand.vmem [shape: bf16[32,16], index: 4, kind: input, shape index: {}]   ;;  %s894_s5 = inlined_call_operand.vmem [shape: bf16[32,16], index: 5, kind: input, shape index: {}]   ;;  %s895_s6 = inlined_call_operand.vmem [shape: f32[1,16], index: 6, kind: input, shape index: {}]   ;;  %s896_s7 = inlined_call_operand.vmem [shape: f32[1,16], index: 7, kind: input, shape index: {}]   ;;  %s897_s8 = inlined_call_operand.vmem [shape: f32[1,16], index: 8, kind: input, shape index: {}]   ;;  %s898_s9 = inlined_call_operand.hbm [shape: f32[2,128], index: 9, kind: output, shape index: {}]  }
   0x1   :  { %v693_v0 = vld [vmem:[%s893_s4] sm:$0xff]   ;;  %641 = vmatprep.subr.bf16.mxu1 %v734_v1  ;;  %633 = vmatprep.subr.bf16.mxu0 %v734_v1  ;;  %v695_v3 = vld [vmem:[%s893_s4 + $0x8] sm:$0xff]  }
   0x2   :  { %v694_v2 = vld [vmem:[%s892_s3] sm:$0xff]   ;;  %642 = vmatpush3.bf16.msra.mxu1 %v693_v0  ;;  %645 = vmatprep.mubr.msk.bf16.mxu1 %vm735_vm0, %v734_v1  ;;  %v697_v4 = vld [vmem:[%s892_s3 + $0x8] sm:$0xff]  }
   0x3   :  { %643 = vmatprep.subr.bf16.mxu1 %v734_v1  ;;  %634 = vmatpush3.bf16.msra.mxu0 %v694_v2  ;;  %v696_v5 = vld [vmem:[%s890_s1] sm:$0xff]  }
   0x4   :  { %635 = vmatprep.subr.bf16.mxu0 %v734_v1  ;;  %637 = vmatprep.mubr.msk.bf16.mxu0 %vm735_vm0, %v734_v1  ;;  %v698_v6 = vld [vmem:[%s889_s0] sm:$0xff]  }
   0x5   :  { %v699_v7 = vld [vmem:[%s894_s5] sm:$0xff]  }
   0x6   :  { %644 = vmatpush3.bf16.msra.mxu1 %v695_v3 }
   0x7   :  { %636 = vmatpush3.bf16.msra.mxu0 %v697_v4  ;;  %657 = vmatprep.subr.bf16.mxu1 %v734_v1 }
   0x8   :  { %649 = vmatprep.subr.bf16.mxu0 %v734_v1 }
   0x9   :  { %646 = vmatmul.mubr.msk.bf16.vlgmr.msra.gmra.mrb[0].mxu1 %vm64_vm1, %v696_v5 }
   0xa   :  { %14 = vsyncpa [#allocation3], 0  ;;  %638 = vmatmul.mubr.msk.bf16.vlgmr.msra.gmra.mrb[0].mxu0 %vm64_vm1, %v698_v6  ;;  %659 = vmatprep.mubr.msk.bf16.mxu1 %vm735_vm0, %v734_v1  ;;  %v700_v8 = vld [vmem:[%s894_s5 + $0x8] sm:$0xff]   ;;  %v701_v9 = vld [vmem:[%s891_s2] sm:$0xff]   ;;  %vm265_vm2 = vcmask 130048   ;;  %vm382_vm3 = vcmask 1043456   ;;  %v480_v6 = vlaneseq }
   0xb   :  { %650 = vmatpush3.bf16.msra.mxu0 %v699_v7  ;;  %653 = vmatprep.mubr.msk.bf16.mxu0 %vm735_vm0, %v734_v1  ;;  %v602_v10 = vld [vmem:[%s896_s7] ss:$0 sm:$0xff]  ;;  %vm358_vm4 = vcmask 64512   ;;  %v736_v4 = vmov 1983009808   ;;  %s738_s7 = smov 32  }
   0xc   :  { %651 = vmatprep.subr.bf16.mxu0 %v734_v1  ;;  %v597_v11 = vld [vmem:[%s895_s6] ss:$0 sm:$0xff]  ;;  %v478_v5 = vunpack.c.l.s4 %v736_v4  ;;  %s740_s26 = smov 48   ;;  %s741_s27 = smov 80   ;;  %vm572_vm5 = vcmask 392192   ;;  %vm574_vm6 = vcmask 523264  }
   0xd   :  { %v607_v32 = vld [vmem:[%s897_s8] ss:$0 sm:$0xff]  ;;  %s739_s8 = smov 16   ;;  %s742_s28 = smov 64   ;;  %vm576_vm7 = vcmask 654336   ;;  %vm578_vm8 = vcmask 785408  }
   0xe   :  { %v479_v7 = vunpack.c.0.s8 %v478_v5  ;;  %s743_s29 = smov 112   ;;  %s744_s30 = smov 96   ;;  %vm580_vm9 = vcmask 916480  }
   0xf   :  { %652 = vmatpush3.bf16.msra.mxu0 %v700_v8  ;;  %v481_v8 = vshrl.u32 %v480_v6, 7  ;;  %s745_s10 = smov [#allocation2]  }
  0x10   :  { %663 = vmatprep.subr.bf16.mxu0 %v734_v1  ;;  %s589_s11 = sshll.u32 %s745_s10, 4  ;;  %s590_s11 = int_to_ptr.vmem [resolvable:$true] %s589_s11 }
  0x11   :  { %s710_s12 = scalar_lea.vmem %s590_s11, 32  ;;  %p715_p1 = scmp.lt.s32.totalorder %s590_s11, %s590_s11 }
  0x12   :  { %654 = vmatmul.mubr.msk.bf16.vlgmr.msra.gmra.mrb[4].mxu0 %vm64_vm1, %v701_v9  ;;  %v737_v9 = vmov 1934713408   ;;  %p711_p0 = scmp.ne.s32.totalorder %s590_s11, %s710_s12  ;;  %p716_p2 = scmp.lt.s32.totalorder %s710_s12, %s710_s12 }
  0x13   :  { %665 = vmatprep.mubr.msk.bf16.mxu0 %vm735_vm0, %v734_v1 }
  0x14   :  { %p717_p3 = por %p716_p2, %p715_p1 }
  0x16   :  { %p718_p4 = pnand %p717_p3, %p711_p0 }
  0xdc   :  { %v176_v12 = vpop.f32.mrb[0].mxu1 }
  0xdd   :  { %v177_v13 = vadd.f32 %v602_v10, %v176_v12  ;;  %v647_v14 = vpop.f32.mrb[1].mxu1  ;;  %v102_v15 = vpop.f32.mrb[0].mxu0 }
  0xde   :  { %v179_v16 = vpop.f32.mrb[2].mxu1  ;;  %v103_v17 = vadd.f32 %v597_v11, %v102_v15  ;;  %v639_v18 = vpop.f32.mrb[1].mxu0 }
  0xdf   :  { %v261_v19 = vpack.c.bf16 %v177_v13, %v177_v13  ;;  %v180_v20 = vadd.f32 %v602_v10, %v179_v16  ;;  %v648_v21 = vpop.f32.mrb[3].mxu1  ;;  %v105_v22 = vpop.f32.mrb[2].mxu0  ;;  %v509_v10 = vunpack.c.l.s4 %v737_v9  ;;  %v482_v16 = vsub.s32 %v479_v7, %v481_v8 }
  0xe0   :  { %v640_v23 = vpop.f32.mrb[3].mxu0  ;;  %v257_v26 = vmul.f32 0.25, %v103_v17  ;;  %v106_v27 = vadd.f32 %v597_v11, %v105_v22 }
  0xe1   :  { %v270_v24 = vsel %vm265_vm2, %v261_v19, 0  ;;  %v262_v25 = vpack.c.bf16 %v180_v20, %v180_v20  ;;  %v510_v18 = vunpack.c.0.s8 %v509_v10 }
  0xe2   :  { %658 = vmatpush3.bf16.xpose.msra.mxu1 %v270_v24  ;;  %v259_v29 = vpack.c.bf16 %v257_v26, %v257_v26  ;;  %v258_v30 = vmul.f32 0.25, %v106_v27 }
  0xe3   :  { %v316_v28 = vsel %vm265_vm2, %v262_v25, 0  ;;  %669 = vmatprep.subr.bf16.mxu1 %v734_v1 }
  0xe4   :  { %664 = vmatpush3.bf16.xpose.msra.mxu0 %v316_v28  ;;  %v260_v31 = vpack.c.bf16 %v258_v30, %v258_v30 }
  0xe5   :  { %675 = vmatprep.subr.bf16.mxu0 %v734_v1  ;;  %v250_v33 = vpop.f32.mrb[4].mxu0 }
  0xe6   :  { %v251_v34 = vadd.f32 %v607_v32, %v250_v33  ;;  %v655_v35 = vpop.f32.mrb[5].mxu0 }
  0xe7   :  { %v253_v36 = vpop.f32.mrb[6].mxu0 }
  0xe8   :  { %v263_v37 = vpack.c.bf16 %v251_v34, %v251_v34  ;;  %v254_v38 = vadd.f32 %v607_v32, %v253_v36  ;;  %v656_v39 = vpop.f32.mrb[7].mxu0 }
  0xe9   :  { %660 = vmatmul.mubr.msk.bf16.vlgmr.msra.gmra.mrb[4].mxu1 %vm265_vm2, %v259_v29  ;;  %v513_v29 = vsub.s32 %v510_v18, %v481_v8 }
  0xea   :  { %671 = vmatprep.mubr.msk.bf16.mxu1 %vm735_vm0, %v734_v1  ;;  %v384_v40 = vsel %vm382_vm3, %v263_v37, 0  ;;  %v264_v41 = vpack.c.bf16 %v254_v38, %v254_v38 }
  0xeb   :  { %666 = vmatmul.mubr.msk.bf16.vlgmr.msra.gmra.mrb[8].mxu0 %vm265_vm2, %v260_v31  ;;  %670 = vmatpush3.bf16.msra.mxu1 %v384_v40 }
  0xec   :  { %677 = vmatprep.mubr.msk.bf16.mxu0 %vm735_vm0, %v734_v1  ;;  %v430_v42 = vsel %vm382_vm3, %v264_v41, 0 }
  0xed   :  { %676 = vmatpush3.bf16.msra.mxu0 %v430_v42 }
 0x1bc   :  { %v306_v43 = vpop.f32.mrb[4].mxu1 }
 0x1bd   :  { %v661_v44 = vpop.f32.mrb[5].mxu1  ;;  %v359_v45 = vsel %vm358_vm4, %v306_v43, -inf }
 0x1be   :  { %360 = vmax.xlane.f32.xlu0 %v359_v45  ;;  %v309_v46 = vpop.f32.mrb[6].mxu1  ;;  %v352_v47 = vpop.f32.mrb[8].mxu0 }
 0x1bf   :  { %v662_v48 = vpop.f32.mrb[7].mxu1  ;;  %v667_v49 = vpop.f32.mrb[9].mxu0  ;;  %v362_v52 = vsel %vm358_vm4, %v352_v47, -inf }
 0x1c0   :  { %v355_v50 = vpop.f32.mrb[10].mxu0 }
 0x1c1   :  { %v668_v51 = vpop.f32.mrb[11].mxu0 }
 0x1c2   :  { %363 = vmax.xlane.f32.xlu0 %v362_v52 }
 0x24b   :  { %v361_v53 = vpop.xlane.xlu0 %360 }
 0x24c   :  { %v365_v54 = vsub.f32 %v306_v43, %v361_v53 }
 0x24e   :  { %v367_v55 = vmul.f32 1.442695, %v365_v54 }
 0x24f   :  { %v364_v56 = vpop.xlane.xlu0 %363 }
 0x250   :  { %702 = vpow2.f32 %v367_v55  ;;  %v366_v57 = vsub.f32 %v352_v47, %v364_v56 }
 0x252   :  { %v369_v58 = vmul.f32 1.442695, %v366_v57 }
 0x254   :  { %704 = vpow2.f32 %v369_v58 }
 0x25a   :  { %v703_v59 = vpop.eup %702 }
 0x25b   :  { %v371_v60 = vsel %vm358_vm4, %v703_v59, 0.0  ;;  %v377_v61 = vpack.c.bf16 %v703_v59, %v703_v59 }
 0x25c   :  { %372 = vadd.xlane.f32.xlu1 %v371_v60 }
 0x25d   :  { %672 = vmatmul.mubr.msk.bf16.vlgmr.msra.gmra.mrb[8].mxu1 %vm358_vm4, %v377_v61 }
 0x25e   :  { %v705_v62 = vpop.eup %704 }
 0x25f   :  { %v374_v63 = vsel %vm358_vm4, %v705_v62, 0.0  ;;  %v378_v0 = vpack.c.bf16 %v705_v62, %v705_v62 }
 0x260   :  { %375 = vadd.xlane.f32.xlu1 %v374_v63 }
 0x261   :  { %678 = vmatmul.mubr.msk.bf16.vlgmr.msra.gmra.mrb[12].mxu0 %vm358_vm4, %v378_v0 }
 0x2e9   :  { %v373_v2 = vpop.xlane.xlu1 %372 }
 0x2ea   :  { %706 = vrcp.f32 %v373_v2 }
 0x2ed   :  { %v376_v3 = vpop.xlane.xlu1 %375 }
 0x2ee   :  { %708 = vrcp.f32 %v376_v3 }
 0x2f4   :  { %v707_v11 = vpop.eup %706 }
 0x2f8   :  { %v709_v19 = vpop.eup %708 }
 0x330   :  { %v420_v12 = vpop.f32.mrb[8].mxu1 }
 0x331   :  { %v474_v13 = vmul.f32 %v707_v11, %v420_v12  ;;  %v673_v14 = vpop.f32.mrb[9].mxu1 }
 0x332   :  { %v423_v15 = vpop.f32.mrb[10].mxu1 }
 0x333   :  { %v674_v17 = vpop.f32.mrb[11].mxu1  ;;  %v476_v21 = vcombine.high %v474_v13, %v734_v1  ;;  %v483_v25 = vrot.slane %v474_v13, %v482_v16 }
 0x334   :  { %v466_v20 = vpop.f32.mrb[12].mxu0 }
 0x335   :  { %v475_v22 = vmul.f32 %v709_v19, %v466_v20  ;;  %v679_v23 = vpop.f32.mrb[13].mxu0  ;;  %v490_v30 = vrot.slane %v476_v21, %v482_v16 }
 0x336   :  { %v469_v24 = vpop.f32.mrb[14].mxu0 }
 0x337   :  { %v491_v26 = vcombine.high %v475_v22, %v734_v1  ;;  %v498_v27 = vrot.slane %v475_v22, %v482_v16  ;;  %v680_v28 = vpop.f32.mrb[15].mxu0 }
 0x339   :  { %v505_v31 = vrot.slane %v491_v26, %v482_v16  ;;  %v506_v32 = vcombine.low %v483_v25, %v498_v27  ;;  %v507_v33 = vcombine.high %v483_v25, %v498_v27 }
 0x33b   :  { %v522_v34 = vcombine.low %v490_v30, %v505_v31  ;;  %v523_v35 = vcombine.high %v490_v30, %v505_v31  ;;  %v521_v36 = vrot.slane %v507_v33, %v513_v29  ;;  %v514_v37 = vrot.slane %v506_v32, %v513_v29 }
 0x33d   :  { %547 = vrot.lane.b32.xlu1 %v521_v36, %s738_s7  ;;  %v538_v38 = vcombine.high %v514_v37, %v734_v1  ;;  %v530_v39 = vrot.slane %v522_v34, %v513_v29  ;;  %v539_v40 = vcombine.high %v521_v36, %v734_v1  ;;  %v537_v42 = vrot.slane %v523_v35, %v513_v29 }
 0x33f   :  { %543 = vrot.lane.b32.xlu0 %v538_v38, %s739_s8  ;;  %v540_v41 = vcombine.high %v530_v39, %v734_v1  ;;  %v541_v43 = vcombine.high %v537_v42, %v734_v1 }
 0x341   :  { %551 = vrot.lane.b32.xlu1 %v539_v40, %s740_s26 }
 0x343   :  { %559 = vrot.lane.b32.xlu0 %v540_v41, %s741_s27 }
 0x345   :  { %555 = vrot.lane.b32.xlu1 %v530_v39, %s742_s28 }
 0x347   :  { %567 = vrot.lane.b32.xlu0 %v541_v43, %s743_s29 }
 0x349   :  { %563 = vrot.lane.b32.xlu1 %v537_v42, %s744_s30 }
 0x3af   :  { %v548_v44 = vpop.permute.xlu1 %547 }
 0x3b1   :  { %v544_v45 = vpop.permute.xlu0 %543 }
 0x3b2   :  { %v570_v46 = vsel %vm265_vm2, %v514_v37, %v544_v45 }
 0x3b3   :  { %v552_v47 = vpop.permute.xlu1 %551  ;;  %v571_v48 = vsel %vm64_vm1, %v570_v46, %v548_v44 }
 0x3b4   :  { %v573_v50 = vsel %vm572_vm5, %v571_v48, %v552_v47 }
 0x3b5   :  { %v560_v49 = vpop.permute.xlu0 %559 }
 0x3b7   :  { %v556_v51 = vpop.permute.xlu1 %555 }
 0x3b8   :  { %v575_v52 = vsel %vm574_vm6, %v573_v50, %v556_v51 }
 0x3b9   :  { %v577_v53 = vsel %vm576_vm7, %v575_v52, %v560_v49  ;;  %v568_v54 = vpop.permute.xlu0 %567 }
 0x3bb   :  { %v564_v1 = vpop.permute.xlu1 %563 }
 0x3bc   :  { %v579_v55 = vsel %vm578_vm8, %v577_v53, %v564_v1 }
 0x3bd   :  { %v581_v56 = vsel %vm580_vm9, %v579_v55, %v568_v54 }
 0x3be   :  { %582 = vst [vmem:[#allocation2] sm:$0x3] %v581_v56 }
 0x3bf   :  { %721 = shalt.err (!%p718_p4)
}
 0x3c0   :  { %s722_s15 = scalar_lea.hbm %s898_s9, 32 }
 0x3c1   :  { %p723_p5 = scmp.ne.s32.totalorder %s898_s9, %s722_s15  ;;  %p726_p6 = scmp.lt.u32.totalorder %s722_s15, %s898_s9 }
 0x3c3   :  { %p728_p7 = pnand %p726_p6, %p723_p5 }
 0x3c5   :  { %731 = shalt.err (!%p728_p7)
}
 0x3c6   :  { %592 = dma.vmem_to_hbm [thread:$0]  %s590_s11, 32, %s898_s9, [#allocation3]  }
 0x3c7   :  { %732 = dma.done.wait [#allocation3], 32  }
 0x3c8   :  { %733 = vsyncadd [#allocation3], 4294967264 }
 0x3c9   :  { %596 = vsyncpa [#allocation3], 1 }

</bundles_post_ra>
